<compile_context>
chip_gen: v5e
topology: v5e:2x2
jax: 0.10.0
libtpu: 0.0.40
codegen_flags: <defaults>
</compile_context>

<pallas_src>
import numpy as np
import jax
import jax.numpy as jnp
from jax.experimental import pallas as pl
from jax.experimental.pallas import tpu as pltpu

# ---- model hyper-parameters (module defaults, small test sizes) ----
EMB = 32                   # embedding_dim
D = 32                     # internal_embedding_dim
NUM_HEADS = 4
HEAD_DIM = D // NUM_HEADS  # 8
MLP_HIDDEN = D // 2        # mlp_hidden_layers = [internal_embedding_dim // 2]
S1 = 8                     # x1 sequence length
S2 = 8                     # x2 sequence length
B = 2                      # batch
LN_EPS = 1e-5

L = S1 + S2 + 1            # real context rows per batch (tokens + cls) = 17
NREAL = B * L              # 34
NROWS = 40                 # sublane(8)-aligned padded row count
NPAD = NROWS - NREAL       # 6 pad rows

# xcat column layout (== Wtok row layout)
C_X1 = 0                   # x1 features  [0, 32)
C_B1 = EMB                 # x1 bias indicator  (32)
C_X2 = EMB + 1             # x2 features  [33, 65)
C_B2 = 2 * EMB + 1         # x2 bias indicator  (65)
C_CLS = 2 * EMB + 2        # cls indicator      (66)
C_PAD = 2 * EMB + 3        # pad indicator      (67)
NCOLS = 72                 # padded contraction dim (multiple of 8)

# Wtok output lanes: [ V (32) | ones (4) | S (4) ]
TOK_OUT = D + 2 * NUM_HEADS        # 40
SCOL = D + NUM_HEADS               # 36

# packed weight slab (single DMA); each matrix block starts 128-lane aligned
WROWS = 72
WTOK_COL = 0               # Wtok            rows 0:72,  cols 0:40
MAT2_COL = 128             # wo rows 0:32, wm1 rows 32:64, mexp rows 64:68
VEC_COL = 256              # bsel rows 0:2, vectors rows 8:15
WCOLS = 384

# vector rows inside the VEC block (8-aligned group)
R_RES, R_LNG, R_LNB, R_BM1, R_MLNG, R_MLNB, R_WM2, R_BM2 = 8, 9, 10, 11, 12, 13, 14, 15

# TODO(synk): num_attention_layers > 1 would just repeat the attention block;
# only the default (1 layer, relu activation) is implemented here.


def reward_kernel(xcat_ref, w_ref, out_ref):
    f32 = jnp.float32

    # ---------- static unpack of the packed slab (aligned offsets) ----------
    wtok = w_ref[:, WTOK_COL:WTOK_COL + TOK_OUT]                    # (72, 40)
    wo = w_ref[0:D, MAT2_COL:MAT2_COL + D]                          # (32, 32)
    wm1 = w_ref[D:2 * D, MAT2_COL:MAT2_COL + MLP_HIDDEN]            # (32, 16)
    mexp = w_ref[2 * D:2 * D + NUM_HEADS,
                 MAT2_COL:MAT2_COL + D + NUM_HEADS]                 # (4, 36) = [mselT | I4]
    bsel = w_ref[0:B, VEC_COL:VEC_COL + NROWS]                      # (2, 40) batch pooler

    res_b = w_ref[R_RES:R_RES + 1, VEC_COL:VEC_COL + D]             # cls + bo
    lng = w_ref[R_LNG:R_LNG + 1, VEC_COL:VEC_COL + D]
    lnb = w_ref[R_LNB:R_LNB + 1, VEC_COL:VEC_COL + D]
    bm1 = w_ref[R_BM1:R_BM1 + 1, VEC_COL:VEC_COL + MLP_HIDDEN]
    mlng = w_ref[R_MLNG:R_MLNG + 1, VEC_COL:VEC_COL + MLP_HIDDEN]
    mlnb = w_ref[R_MLNB:R_MLNB + 1, VEC_COL:VEC_COL + MLP_HIDDEN]
    wm2t = w_ref[R_WM2:R_WM2 + 1, VEC_COL:VEC_COL + MLP_HIDDEN]
    bm2 = w_ref[R_BM2:R_BM2 + 1, VEC_COL:VEC_COL + 1]

    # ---------- one wide context matmul: [V | ones | S] for every row -------
    # rows = all tokens of both batches + per-batch cls rows + pad rows
    vs = jnp.dot(xcat_ref[...], wtok, preferred_element_type=f32)   # (40, 40)
    vo = vs[:, 0:SCOL]                                              # (40, 36) [V | ones]
    s = vs[:, SCOL:SCOL + NUM_HEADS]                                # (40, 4) scores

    # ---------- segmented softmax (normalize after pooling) -----------------
    # shared per-head max shift; exact since softmax is shift-invariant.
    # TODO(synk): a per-batch (segmented) max would be more robust if one
    # batch's scores can sit ~87+ below the other's (underflow of its block).
    m = jnp.max(s, axis=0, keepdims=True)                           # (1, 4)
    e = jnp.exp(s - m)                                              # (40, 4); pad rows -> 0

    # head-expand e to the 32 V lanes and carry e itself in 4 extra lanes,
    # then pool per batch in ONE matmul -> [attn_un | denom]
    evc = jnp.dot(e, mexp, preferred_element_type=f32) * vo         # (40, 36)
    pooled = jnp.dot(bsel, evc, preferred_element_type=f32)         # (2, 36)
    attn_un = pooled[:, 0:D]                                        # (2, 32)
    denom = pooled[:, D:D + NUM_HEADS]                              # (2, 4)
    denom_d = jnp.dot(denom, mexp[:, 0:D], preferred_element_type=f32)  # (2, 32)
    attn = attn_un / denom_d                                        # normalized heads

    # ---------- out-proj + residual (cls + bo folded) + LayerNorm -----------
    y = jnp.dot(attn, wo, preferred_element_type=f32) + res_b       # (2, 32)
    mu = jnp.mean(y, axis=-1, keepdims=True)
    var = jnp.mean((y - mu) ** 2, axis=-1, keepdims=True)
    y = (y - mu) * jax.lax.rsqrt(var + LN_EPS) * lng + lnb

    # ---------- MLP head: Linear -> LayerNorm -> ReLU -> Linear(H->1) -------
    h1 = jnp.dot(y, wm1, preferred_element_type=f32) + bm1          # (2, 16)
    mu2 = jnp.mean(h1, axis=-1, keepdims=True)
    var2 = jnp.mean((h1 - mu2) ** 2, axis=-1, keepdims=True)
    h1 = (h1 - mu2) * jax.lax.rsqrt(var2 + LN_EPS) * mlng + mlnb
    h1 = jnp.maximum(h1, 0.0)

    # final H->1 projection as VPU multiply + lane reduce (no MXU at the tail)
    out_ref[...] = jnp.sum(h1 * wm2t, axis=-1, keepdims=True) + bm2  # (2, 1)


def pack_params(p):
    """Fold all parameter-only algebra (in float64) and pack into one slab."""
    g = lambda a: np.asarray(jax.device_get(a), dtype=np.float64)
    w1, b1, w2, b2 = g(p["w1"]), g(p["b1"]), g(p["w2"]), g(p["b2"])
    cls = g(p["cls"])
    wq, bq, wk, bk = g(p["wq"]), g(p["bq"]), g(p["wk"]), g(p["bk"])
    wv, bv, wo, bo = g(p["wv"]), g(p["bv"]), g(p["wo"]), g(p["bo"])
    lng, lnb = g(p["lng"]), g(p["lnb"])
    wm1, bm1 = g(p["wm1"]), g(p["bm1"])
    mlng, mlnb = g(p["mlng"]), g(p["mlnb"])
    wm2, bm2 = g(p["wm2"]), g(p["bm2"])

    # head selector (D, NH) and its transpose
    msel = np.zeros((D, NUM_HEADS))
    for h in range(NUM_HEADS):
        msel[h * HEAD_DIM:(h + 1) * HEAD_DIM, h] = 1.0
    mselT = msel.T

    # fold the parameter-only query into the key projection -> score weights
    q = (cls @ wq + bq) / np.sqrt(HEAD_DIM)          # (1, D)
    WS = (wk * q) @ msel                             # (D, NH)
    bS = (bk * q) @ msel                             # (1, NH)

    # compose token projections with the value / score projections
    def tok_rows(w, b):
        feat = np.concatenate([w @ wv, np.zeros((EMB, NUM_HEADS)), w @ WS], axis=1)
        bias = np.concatenate([b @ wv + bv, np.ones((1, NUM_HEADS)), b @ WS + bS], axis=1)
        return feat, bias

    f1, bias1 = tok_rows(w1, b1)
    f2, bias2 = tok_rows(w2, b2)
    cls_row = np.concatenate([cls @ wv + bv, np.ones((1, NUM_HEADS)), cls @ WS + bS], axis=1)
    pad_row = np.concatenate([np.zeros((1, D + NUM_HEADS)), -1e9 * np.ones((1, NUM_HEADS))], axis=1)

    wtok = np.zeros((NCOLS, TOK_OUT))
    wtok[C_X1:C_X1 + EMB] = f1
    wtok[C_B1] = bias1[0]
    wtok[C_X2:C_X2 + EMB] = f2
    wtok[C_B2] = bias2[0]
    wtok[C_CLS] = cls_row[0]
    wtok[C_PAD] = pad_row[0]

    mexp = np.concatenate([mselT, np.eye(NUM_HEADS)], axis=1)       # (4, 36)
    bsel = np.zeros((B, NROWS))
    for b_ in range(B):
        bsel[b_, b_ * L:(b_ + 1) * L] = 1.0

    wmat = np.zeros((WROWS, WCOLS))
    wmat[0:NCOLS, WTOK_COL:WTOK_COL + TOK_OUT] = wtok
    wmat[0:D, MAT2_COL:MAT2_COL + D] = wo
    wmat[D:2 * D, MAT2_COL:MAT2_COL + MLP_HIDDEN] = wm1
    wmat[2 * D:2 * D + NUM_HEADS, MAT2_COL:MAT2_COL + D + NUM_HEADS] = mexp
    wmat[0:B, VEC_COL:VEC_COL + NROWS] = bsel
    wmat[R_RES, VEC_COL:VEC_COL + D] = (cls + bo)[0]
    wmat[R_LNG, VEC_COL:VEC_COL + D] = lng[0]
    wmat[R_LNB, VEC_COL:VEC_COL + D] = lnb[0]
    wmat[R_BM1, VEC_COL:VEC_COL + MLP_HIDDEN] = bm1[0]
    wmat[R_MLNG, VEC_COL:VEC_COL + MLP_HIDDEN] = mlng[0]
    wmat[R_MLNB, VEC_COL:VEC_COL + MLP_HIDDEN] = mlnb[0]
    wmat[R_WM2, VEC_COL:VEC_COL + MLP_HIDDEN] = wm2[:, 0]
    wmat[R_BM2, VEC_COL] = bm2[0, 0]
    return jnp.asarray(wmat, dtype=jnp.float32)


def build_xcat(x1, x2):
    """Host-side assembly of the single kernel input (tokens + indicators)."""
    f32 = jnp.float32
    x1a = jnp.concatenate(
        [x1, jnp.ones((B, S1, 1), f32), jnp.zeros((B, S1, NCOLS - EMB - 1), f32)], axis=-1)
    x2a = jnp.concatenate(
        [jnp.zeros((B, S2, EMB + 1), f32), x2, jnp.ones((B, S2, 1), f32),
         jnp.zeros((B, S2, NCOLS - 2 * EMB - 2), f32)], axis=-1)
    cls_ind = jnp.zeros((B, 1, NCOLS), f32).at[:, :, C_CLS].set(1.0)
    blocks = jnp.concatenate([x1a, x2a, cls_ind], axis=1).reshape(NREAL, NCOLS)
    pad = jnp.zeros((NPAD, NCOLS), f32).at[:, C_PAD].set(1.0)
    return jnp.concatenate([blocks, pad], axis=0)                   # (40, 72)


@jax.jit
def reward_predictor(x1, x2, wmat):
    xcat = build_xcat(x1, x2)
    out = pl.pallas_call(
        reward_kernel,
        out_shape=jax.ShapeDtypeStruct((B, 1), jnp.float32),
        grid=(1,),
        in_specs=[
            pl.BlockSpec((NROWS, NCOLS), lambda i: (0, 0)),
            pl.BlockSpec((WROWS, WCOLS), lambda i: (0, 0)),
        ],
        out_specs=pl.BlockSpec((B, 1), lambda i: (0, 0)),
        compiler_params=pltpu.CompilerParams(
            dimension_semantics=("arbitrary",)),
    )(xcat, wmat)
    return out.reshape(B, 1, 1)                                     # (B, 1, 1)


# ----------------------------- pure-JAX reference ---------------------------
def reference(x1, x2, p):
    def ln(x, g, b):
        mu = jnp.mean(x, -1, keepdims=True)
        var = jnp.mean((x - mu) ** 2, -1, keepdims=True)
        return (x - mu) * jax.lax.rsqrt(var + LN_EPS) * g + b

    p1 = x1 @ p["w1"] + p["b1"]
    p2 = x2 @ p["w2"] + p["b2"]
    token_seq = jnp.concatenate([p1, p2], axis=1)                # (B, S1+S2, D)
    cls = jnp.broadcast_to(p["cls"][None], (x1.shape[0], 1, D))
    ctx = jnp.concatenate([cls, token_seq], axis=1)              # (B, L, D)

    q = cls @ p["wq"] + p["bq"]
    k = ctx @ p["wk"] + p["bk"]
    v = ctx @ p["wv"] + p["bv"]
    qh = q.reshape(-1, 1, NUM_HEADS, HEAD_DIM).transpose(0, 2, 1, 3)
    kh = k.reshape(-1, k.shape[1], NUM_HEADS, HEAD_DIM).transpose(0, 2, 1, 3)
    vh = v.reshape(-1, v.shape[1], NUM_HEADS, HEAD_DIM).transpose(0, 2, 1, 3)
    s = jnp.einsum("bhqd,bhkd->bhqk", qh, kh) / (HEAD_DIM ** 0.5)
    a = jax.nn.softmax(s, axis=-1)
    o = jnp.einsum("bhqk,bhkd->bhqd", a, vh)
    o = o.transpose(0, 2, 1, 3).reshape(-1, 1, D)
    attended = o @ p["wo"] + p["bo"]

    y = ln(cls + attended, p["lng"], p["lnb"])
    h1 = ln(y @ p["wm1"] + p["bm1"], p["mlng"], p["mlnb"])
    h1 = jnp.maximum(h1, 0.0)
    return h1 @ p["wm2"] + p["bm2"]


def init_params(key):
    ks = jax.random.split(key, 16)
    n = lambda k, s: (0.1 * jax.random.normal(k, s)).astype(jnp.float32)
    return {
        "w1": n(ks[0], (EMB, D)), "b1": n(ks[1], (1, D)),
        "w2": n(ks[2], (EMB, D)), "b2": n(ks[3], (1, D)),
        "cls": n(ks[4], (1, D)),
        "wq": n(ks[5], (D, D)), "bq": n(ks[6], (1, D)),
        "wk": n(ks[7], (D, D)), "bk": n(ks[8], (1, D)),
        "wv": n(ks[9], (D, D)), "bv": n(ks[10], (1, D)),
        "wo": n(ks[11], (D, D)), "bo": n(ks[12], (1, D)),
        "lng": jnp.ones((1, D), jnp.float32), "lnb": jnp.zeros((1, D), jnp.float32),
        "wm1": n(ks[13], (D, MLP_HIDDEN)), "bm1": n(ks[14], (1, MLP_HIDDEN)),
        "mlng": jnp.ones((1, MLP_HIDDEN), jnp.float32),
        "mlnb": jnp.zeros((1, MLP_HIDDEN), jnp.float32),
        "wm2": n(ks[15], (MLP_HIDDEN, 1)), "bm2": jnp.zeros((1, 1), jnp.float32),
    }


if __name__ == "__main__":
    key = jax.random.PRNGKey(0)
    k1, k2, kp = jax.random.split(key, 3)
    x1 = jax.random.normal(k1, (B, S1, EMB), jnp.float32)
    x2 = jax.random.normal(k2, (B, S2, EMB), jnp.float32)
    params = init_params(kp)
    wmat = pack_params(params)

    out = reward_predictor(x1, x2, wmat)
    out = jax.block_until_ready(out)

    ref = reference(x1, x2, params)
    assert out.shape == (B, 1, 1), out.shape
    # tolerance covers default (bf16-pass) MXU precision of both kernel & ref
    assert jnp.allclose(out, ref, rtol=5e-3, atol=5e-3), (out, ref)
    print("KERNEL_OK")
</pallas_src>

<mosaic_0001>
module attributes {stable_mosaic.version = 11 : i64} {
  func.func @reward_kernel(%arg0: i32, %arg1: memref<40x72xf32, #tpu.memory_space<vmem>>, %arg2: memref<72x384xf32, #tpu.memory_space<vmem>>, %arg3: memref<2x1xf32, #tpu.memory_space<vmem>>) attributes {dimension_semantics = [#tpu.dimension_semantics<arbitrary>], iteration_bounds = array<i64: 1>, scalar_prefetch = 0 : i64, scratch_operands = 0 : i64, tpu.core_type = #tpu.core_type<tc>, window_params = [{pipeline_mode = #tpu.pipeline_mode<synchronous>, transform_indices = @transform_0, window_bounds = array<i64: 40, 72>}, {pipeline_mode = #tpu.pipeline_mode<synchronous>, transform_indices = @transform_1, window_bounds = array<i64: 72, 384>}, {pipeline_mode = #tpu.pipeline_mode<synchronous>, transform_indices = @transform_2, window_bounds = array<i64: 2, 1>}]} {
    %c0 = arith.constant 0 : index
    %c0_0 = arith.constant 0 : index
    %0 = vector.load %arg2[%c0, %c0_0] : memref<72x384xf32, #tpu.memory_space<vmem>>, vector<72x40xf32>
    %c0_1 = arith.constant 0 : index
    %c128 = arith.constant 128 : index
    %1 = vector.load %arg2[%c0_1, %c128] : memref<72x384xf32, #tpu.memory_space<vmem>>, vector<32x32xf32>
    %c32 = arith.constant 32 : index
    %c128_2 = arith.constant 128 : index
    %2 = vector.load %arg2[%c32, %c128_2] : memref<72x384xf32, #tpu.memory_space<vmem>>, vector<32x16xf32>
    %c64 = arith.constant 64 : index
    %c128_3 = arith.constant 128 : index
    %3 = vector.load %arg2[%c64, %c128_3] : memref<72x384xf32, #tpu.memory_space<vmem>>, vector<4x36xf32>
    %c0_4 = arith.constant 0 : index
    %c256 = arith.constant 256 : index
    %4 = vector.load %arg2[%c0_4, %c256] : memref<72x384xf32, #tpu.memory_space<vmem>>, vector<2x40xf32>
    %c8 = arith.constant 8 : index
    %c256_5 = arith.constant 256 : index
    %5 = vector.load %arg2[%c8, %c256_5] : memref<72x384xf32, #tpu.memory_space<vmem>>, vector<1x32xf32>
    %c9 = arith.constant 9 : index
    %c256_6 = arith.constant 256 : index
    %6 = vector.load %arg2[%c9, %c256_6] : memref<72x384xf32, #tpu.memory_space<vmem>>, vector<1x32xf32>
    %c10 = arith.constant 10 : index
    %c256_7 = arith.constant 256 : index
    %7 = vector.load %arg2[%c10, %c256_7] : memref<72x384xf32, #tpu.memory_space<vmem>>, vector<1x32xf32>
    %c11 = arith.constant 11 : index
    %c256_8 = arith.constant 256 : index
    %8 = vector.load %arg2[%c11, %c256_8] : memref<72x384xf32, #tpu.memory_space<vmem>>, vector<1x16xf32>
    %c12 = arith.constant 12 : index
    %c256_9 = arith.constant 256 : index
    %9 = vector.load %arg2[%c12, %c256_9] : memref<72x384xf32, #tpu.memory_space<vmem>>, vector<1x16xf32>
    %c13 = arith.constant 13 : index
    %c256_10 = arith.constant 256 : index
    %10 = vector.load %arg2[%c13, %c256_10] : memref<72x384xf32, #tpu.memory_space<vmem>>, vector<1x16xf32>
    %c14 = arith.constant 14 : index
    %c256_11 = arith.constant 256 : index
    %11 = vector.load %arg2[%c14, %c256_11] : memref<72x384xf32, #tpu.memory_space<vmem>>, vector<1x16xf32>
    %c15 = arith.constant 15 : index
    %c256_12 = arith.constant 256 : index
    %12 = vector.load %arg2[%c15, %c256_12] : memref<72x384xf32, #tpu.memory_space<vmem>>, vector<1x1xf32>
    %c0_13 = arith.constant 0 : index
    %c0_14 = arith.constant 0 : index
    %13 = vector.load %arg1[%c0_13, %c0_14] : memref<40x72xf32, #tpu.memory_space<vmem>>, vector<40x72xf32>
    %cst = arith.constant dense<0.000000e+00> : vector<40x40xf32>
    %14 = tpu.matmul %13, %0, %cst {dimension_numbers = #tpu.dot_dimension_numbers<[1], [0], [0], [1], [0, 0, 1, 1], [], []>} : vector<40x72xf32>, vector<72x40xf32>, vector<40x40xf32> -> vector<40x40xf32>
    %15 = vector.extract_strided_slice %14 {offsets = [0, 0], sizes = [40, 36], strides = [1, 1]} : vector<40x40xf32> to vector<40x36xf32>
    %16 = vector.extract_strided_slice %14 {offsets = [0, 36], sizes = [40, 4], strides = [1, 1]} : vector<40x40xf32> to vector<40x4xf32>
    %cst_15 = arith.constant dense<0xFF800000> : vector<4xf32>
    %17 = vector.multi_reduction <maximumf>, %16, %cst_15 [0] : vector<40x4xf32> to vector<4xf32>
    %18 = vector.shape_cast %17 : vector<4xf32> to vector<1x4xf32>
    %19 = vector.broadcast %18 : vector<1x4xf32> to vector<40x4xf32>
    %20 = arith.subf %16, %19 : vector<40x4xf32>
    %21 = math.exp %20 : vector<40x4xf32>
    %cst_16 = arith.constant dense<0.000000e+00> : vector<40x36xf32>
    %22 = tpu.matmul %21, %3, %cst_16 {dimension_numbers = #tpu.dot_dimension_numbers<[1], [0], [0], [1], [0, 0, 1, 1], [], []>} : vector<40x4xf32>, vector<4x36xf32>, vector<40x36xf32> -> vector<40x36xf32>
    %23 = arith.mulf %22, %15 : vector<40x36xf32>
    %cst_17 = arith.constant dense<0.000000e+00> : vector<2x36xf32>
    %24 = tpu.matmul %4, %23, %cst_17 {dimension_numbers = #tpu.dot_dimension_numbers<[1], [0], [0], [1], [0, 0, 1, 1], [], []>} : vector<2x40xf32>, vector<40x36xf32>, vector<2x36xf32> -> vector<2x36xf32>
    %25 = vector.extract_strided_slice %24 {offsets = [0, 0], sizes = [2, 32], strides = [1, 1]} : vector<2x36xf32> to vector<2x32xf32>
    %26 = vector.extract_strided_slice %24 {offsets = [0, 32], sizes = [2, 4], strides = [1, 1]} : vector<2x36xf32> to vector<2x4xf32>
    %27 = vector.extract_strided_slice %3 {offsets = [0, 0], sizes = [4, 32], strides = [1, 1]} : vector<4x36xf32> to vector<4x32xf32>
    %cst_18 = arith.constant dense<0.000000e+00> : vector<2x32xf32>
    %28 = tpu.matmul %26, %27, %cst_18 {dimension_numbers = #tpu.dot_dimension_numbers<[1], [0], [0], [1], [0, 0, 1, 1], [], []>} : vector<2x4xf32>, vector<4x32xf32>, vector<2x32xf32> -> vector<2x32xf32>
    %29 = arith.divf %25, %28 : vector<2x32xf32>
    %cst_19 = arith.constant dense<0.000000e+00> : vector<2x32xf32>
    %30 = tpu.matmul %29, %1, %cst_19 {dimension_numbers = #tpu.dot_dimension_numbers<[1], [0], [0], [1], [0, 0, 1, 1], [], []>} : vector<2x32xf32>, vector<32x32xf32>, vector<2x32xf32> -> vector<2x32xf32>
    %31 = vector.broadcast %5 : vector<1x32xf32> to vector<2x32xf32>
    %32 = arith.addf %30, %31 : vector<2x32xf32>
    %cst_20 = arith.constant dense<0.000000e+00> : vector<2xf32>
    %33 = vector.multi_reduction <add>, %32, %cst_20 [1] : vector<2x32xf32> to vector<2xf32>
    %34 = vector.shape_cast %33 : vector<2xf32> to vector<2x1xf32>
    %cst_21 = arith.constant 3.200000e+01 : f32
    %35 = vector.broadcast %cst_21 : f32 to vector<2x1xf32>
    %36 = arith.divf %34, %35 : vector<2x1xf32>
    %37 = vector.broadcast %36 : vector<2x1xf32> to vector<2x32xf32>
    %38 = arith.subf %32, %37 : vector<2x32xf32>
    %39 = arith.mulf %38, %38 : vector<2x32xf32>
    %cst_22 = arith.constant dense<0.000000e+00> : vector<2xf32>
    %40 = vector.multi_reduction <add>, %39, %cst_22 [1] : vector<2x32xf32> to vector<2xf32>
    %41 = vector.shape_cast %40 : vector<2xf32> to vector<2x1xf32>
    %cst_23 = arith.constant 3.200000e+01 : f32
    %42 = vector.broadcast %cst_23 : f32 to vector<2x1xf32>
    %43 = arith.divf %41, %42 : vector<2x1xf32>
    %44 = vector.broadcast %36 : vector<2x1xf32> to vector<2x32xf32>
    %45 = arith.subf %32, %44 : vector<2x32xf32>
    %cst_24 = arith.constant 9.99999974E-6 : f32
    %46 = vector.broadcast %cst_24 : f32 to vector<2x1xf32>
    %47 = arith.addf %43, %46 : vector<2x1xf32>
    %48 = math.rsqrt %47 : vector<2x1xf32>
    %49 = vector.broadcast %48 : vector<2x1xf32> to vector<2x32xf32>
    %50 = arith.mulf %45, %49 : vector<2x32xf32>
    %51 = vector.broadcast %6 : vector<1x32xf32> to vector<2x32xf32>
    %52 = arith.mulf %50, %51 : vector<2x32xf32>
    %53 = vector.broadcast %7 : vector<1x32xf32> to vector<2x32xf32>
    %54 = arith.addf %52, %53 : vector<2x32xf32>
    %cst_25 = arith.constant dense<0.000000e+00> : vector<2x16xf32>
    %55 = tpu.matmul %54, %2, %cst_25 {dimension_numbers = #tpu.dot_dimension_numbers<[1], [0], [0], [1], [0, 0, 1, 1], [], []>} : vector<2x32xf32>, vector<32x16xf32>, vector<2x16xf32> -> vector<2x16xf32>
    %56 = vector.broadcast %8 : vector<1x16xf32> to vector<2x16xf32>
    %57 = arith.addf %55, %56 : vector<2x16xf32>
    %cst_26 = arith.constant dense<0.000000e+00> : vector<2xf32>
    %58 = vector.multi_reduction <add>, %57, %cst_26 [1] : vector<2x16xf32> to vector<2xf32>
    %59 = vector.shape_cast %58 : vector<2xf32> to vector<2x1xf32>
    %cst_27 = arith.constant 1.600000e+01 : f32
    %60 = vector.broadcast %cst_27 : f32 to vector<2x1xf32>
    %61 = arith.divf %59, %60 : vector<2x1xf32>
    %62 = vector.broadcast %61 : vector<2x1xf32> to vector<2x16xf32>
    %63 = arith.subf %57, %62 : vector<2x16xf32>
    %64 = arith.mulf %63, %63 : vector<2x16xf32>
    %cst_28 = arith.constant dense<0.000000e+00> : vector<2xf32>
    %65 = vector.multi_reduction <add>, %64, %cst_28 [1] : vector<2x16xf32> to vector<2xf32>
    %66 = vector.shape_cast %65 : vector<2xf32> to vector<2x1xf32>
    %cst_29 = arith.constant 1.600000e+01 : f32
    %67 = vector.broadcast %cst_29 : f32 to vector<2x1xf32>
    %68 = arith.divf %66, %67 : vector<2x1xf32>
    %69 = vector.broadcast %61 : vector<2x1xf32> to vector<2x16xf32>
    %70 = arith.subf %57, %69 : vector<2x16xf32>
    %cst_30 = arith.constant 9.99999974E-6 : f32
    %71 = vector.broadcast %cst_30 : f32 to vector<2x1xf32>
    %72 = arith.addf %68, %71 : vector<2x1xf32>
    %73 = math.rsqrt %72 : vector<2x1xf32>
    %74 = vector.broadcast %73 : vector<2x1xf32> to vector<2x16xf32>
    %75 = arith.mulf %70, %74 : vector<2x16xf32>
    %76 = vector.broadcast %9 : vector<1x16xf32> to vector<2x16xf32>
    %77 = arith.mulf %75, %76 : vector<2x16xf32>
    %78 = vector.broadcast %10 : vector<1x16xf32> to vector<2x16xf32>
    %79 = arith.addf %77, %78 : vector<2x16xf32>
    %cst_31 = arith.constant 0.000000e+00 : f32
    %80 = vector.broadcast %cst_31 : f32 to vector<2x16xf32>
    %81 = arith.maximumf %79, %80 : vector<2x16xf32>
    %82 = vector.broadcast %11 : vector<1x16xf32> to vector<2x16xf32>
    %83 = arith.mulf %81, %82 : vector<2x16xf32>
    %cst_32 = arith.constant dense<0.000000e+00> : vector<2xf32>
    %84 = vector.multi_reduction <add>, %83, %cst_32 [1] : vector<2x16xf32> to vector<2xf32>
    %85 = vector.shape_cast %84 : vector<2xf32> to vector<2x1xf32>
    %86 = vector.broadcast %12 : vector<1x1xf32> to vector<2x1xf32>
    %87 = arith.addf %85, %86 : vector<2x1xf32>
    %c0_33 = arith.constant 0 : index
    %c0_34 = arith.constant 0 : index
    %88 = vector.load %arg3[%c0_33, %c0_34] : memref<2x1xf32, #tpu.memory_space<vmem>>, vector<2x1xf32>
    tpu.vector_store %arg3[%c0_33, %c0_34], %87 {strides = array<i32>} : memref<2x1xf32, #tpu.memory_space<vmem>>, vector<2x1xf32>,
    return
  }
  func.func @transform_0(%arg0: i32) -> (i32, i32) {
    %c0_i32 = arith.constant 0 : i32
    %c0_i32_0 = arith.constant 0 : i32
    %c0_i32_1 = arith.constant 0 : i32
    return %c0_i32, %c0_i32_0 : i32, i32
  }
  func.func @transform_1(%arg0: i32) -> (i32, i32) {
    %c0_i32 = arith.constant 0 : i32
    %c0_i32_0 = arith.constant 0 : i32
    %c0_i32_1 = arith.constant 0 : i32
    return %c0_i32, %c0_i32_0 : i32, i32
  }
  func.func @transform_2(%arg0: i32) -> (i32, i32) {
    %c0_i32 = arith.constant 0 : i32
    %c0_i32_0 = arith.constant 0 : i32
    %c0_i32_1 = arith.constant 0 : i32
    return %c0_i32, %c0_i32_0 : i32, i32
  }
}

</mosaic_0001>

<bundles_post_ra>
// kernel: reward_predictor.1
= control target key start
LH: loop header
LB: loop body
LE: loop exit
PB: predicated region body
PF: predicated region fallthrough
CT: control target
= control target key end

     0   :  { %vm43_vm0 = vcmask 588800   ;;  %vm91_vm1 = vcmask 326944   ;;  %vm148_vm2 = vcmask 1043456   ;;  %vm137_vm3 = vcmask 31744   ;;  %s426_s13 = smov 96   ;;  %s573_s1 = inlined_call_operand.vmem [shape: f32[72,384], index: 1, kind: input, shape index: {}]   ;;  %s574_s0 = inlined_call_operand.vmem [shape: f32[40,72], index: 0, kind: input, shape index: {}]   ;;  %s575_s2 = inlined_call_operand.vmem [shape: f32[2,1], index: 2, kind: output, shape index: {}]  }
   0x1   :  { %v19_v0 = vld [vmem:[%s573_s1 + $0xc0] sm:$0xff]  ;;  %v18_v1 = vld [vmem:[%s573_s1 + $0xa8] sm:$0xff]  ;;  %v17_v2 = vld [vmem:[%s573_s1 + $0x90] sm:$0xff]  ;;  %vm189_vm4 = vcmask 326656   ;;  %vm253_vm9 = vcmask 261120   ;;  %vm277_vm10 = vcmask 254976  }
   0x2   :  { %66 = vmatpush.msra.mxu0 %v19_v0  ;;  %392 = vmatpush.msra.mxu3 %v19_v0  ;;  %v16_v3 = vld [vmem:[%s573_s1 + $0x78] sm:$0xff]  ;;  %v15_v4 = vld [vmem:[%s573_s1 + $0x60] sm:$0xff]  ;;  %v14_v5 = vld [vmem:[%s573_s1 + $0x48] sm:$0xff]  ;;  %vm332_vm15 = vcmask 123904  }
   0x3   :  { %v13_v6 = vld [vmem:[%s573_s1 + $0x30] sm:$0xff]  ;;  %v12_v7 = vld [vmem:[%s573_s1 + $0x18] sm:$0xff]  ;;  %v11_v8 = vld [vmem:[%s573_s1] sm:$0xff] }
   0x4   :  { %67 = vmatpush.msra.mxu0 %v18_v1  ;;  %393 = vmatpush.msra.mxu3 %v18_v1  ;;  %v38_v9 = vld [vmem:[%s574_s0] sm:$0xff]  ;;  %v41_v10 = vld [vmem:[%s574_s0 + $0x18] sm:$0xff]  ;;  %v39_v11 = vld [vmem:[%s574_s0 + $0x8] sm:$0xff] }
   0x5   :  { %v42_v12 = vld [vmem:[%s574_s0 + $0x20] sm:$0xff]  ;;  %v40_v13 = vld [vmem:[%s574_s0 + $0x10] sm:$0xff]  ;;  %s425_s0 = smov 92   ;;  %v28_v49 = vld [vmem:[%s573_s1 + $0xc8] sm:$0xf] }
   0x6   :  { %68 = vmatpush.msra.mxu0 %v17_v2  ;;  %394 = vmatpush.msra.mxu3 %v17_v2  ;;  %v29_v1 = vld [vmem:[%s573_s1 + $0x10] sm:$0x3] }
   0x7   :  { %381 = vmatpush.msk.msra.mxu1 %vm148_vm2, %v28_v49 }
   0x8   :  { %69 = vmatpush.msra.mxu0 %v16_v3  ;;  %395 = vmatpush.msra.mxu3 %v16_v3 }
   0xa   :  { %70 = vmatpush.msra.mxu0 %v15_v4  ;;  %396 = vmatpush.msra.mxu3 %v15_v4  ;;  %v23_v4 = vld [vmem:[%s573_s1 + $0x50] sm:$0xff] }
   0xc   :  { %71 = vmatpush.msra.mxu0 %v14_v5  ;;  %397 = vmatpush.msra.mxu3 %v14_v5  ;;  %v22_v5 = vld [vmem:[%s573_s1 + $0x38] sm:$0xff] }
   0xe   :  { %72 = vmatpush.msra.mxu0 %v13_v6  ;;  %398 = vmatpush.msra.mxu3 %v13_v6  ;;  %v21_v6 = vld [vmem:[%s573_s1 + $0x20] sm:$0xff] }
  0x10   :  { %73 = vmatpush.msra.mxu0 %v12_v7  ;;  %399 = vmatpush.msra.mxu3 %v12_v7  ;;  %v20_v7 = vld [vmem:[%s573_s1 + $0x8] sm:$0xff] }
  0x12   :  { %74 = vmatpush.msra.mxu0 %v11_v8  ;;  %400 = vmatpush.msra.mxu3 %v11_v8 }
  0x13   :  { %376 = vmatmul.msk.f32.vlgmr.msra.gmra.mxu0 %vm43_vm0, %v38_v9  ;;  %379 = vmatmul.msk.f32.vlgmr.msra.gmra.mxu3 %vm43_vm0, %v41_v10 }
  0x14   :  { %269 = vmatpush.msrb.mxu3 %v23_v4 }
  0x16   :  { %270 = vmatpush.msrb.mxu3 %v22_v5 }
  0x18   :  { %271 = vmatpush.msrb.mxu3 %v21_v6 }
  0x1a   :  { %272 = vmatpush.msrb.mxu3 %v20_v7 }
  0x1b   :  { %377 = vmatmul.msk.f32.gmra.mxu0 %vm43_vm0, %v39_v11  ;;  %380 = vmatmul.msk.f32.gmra.mxu3 %vm43_vm0, %v42_v12 }
  0x23   :  { %378 = vmatmul.msk.f32.gmra.mxu0 %vm43_vm0, %v40_v13 }
  0x90   :  { %v486_v14 = vpop.f32.mrf.mxu0 }
  0x91   :  { %v92_v18 = vsel %vm91_vm1, %v486_v14, -inf }
  0x96   :  { %v488_v15 = vpop.f32.mrf.mxu3 }
  0x97   :  { %v95_v22 = vsel %vm91_vm1, %v488_v15, -inf }
  0x98   :  { %v490_v16 = vpop.f32.mrf.mxu0 }
  0x99   :  { %v93_v23 = vsel %vm91_vm1, %v490_v16, -inf }
  0x9e   :  { %v88_v17 = vpop.f32.mrf.mxu3 }
  0x9f   :  { %v96_v19 = vsel %vm91_vm1, %v88_v17, -inf }
  0xa0   :  { %v97_v20 = vmax.f32 %v92_v18, %v96_v19  ;;  %v82_v21 = vpop.f32.mrf.mxu0 }
  0xa1   :  { %v94_v24 = vsel %vm91_vm1, %v82_v21, -inf }
  0xa2   :  { %v98_v25 = vmax.f32 %v97_v20, %v93_v23  ;;  %v99_v26 = vmax.f32 %v94_v24, %v95_v22  ;;  %v30_v20 = vld [vmem:[%s573_s1 + $0x28] ss:$0 sm:$0xff]  ;;  %v427_v24 = vmov 32.0  }
  0xa4   :  { %v100_v27 = vmax.f32 %v98_v25, %v99_v26 }
  0xa6   :  { %v101_v28 = vrot.slane %v100_v27, 4 }
  0xa8   :  { %v102_v29 = vmax.f32 %v100_v27, %v101_v28 }
  0xaa   :  { %v103_v30 = vrot.slane %v102_v29, 2 }
  0xac   :  { %v104_v31 = vmax.f32 %v102_v29, %v103_v30 }
  0xae   :  { %v105_v32 = vrot.slane %v104_v31, 1 }
  0xb0   :  { %v106_v33 = vmax.f32 %v104_v31, %v105_v32 }
  0xb2   :  { %v109_v34 = vsub.f32 %v82_v21, %v106_v33  ;;  %v111_v35 = vsub.f32 %v88_v17, %v106_v33  ;;  %v107_v36 = vsub.f32 %v486_v14, %v106_v33  ;;  %v110_v40 = vsub.f32 %v488_v15, %v106_v33 }
  0xb3   :  { %v108_v41 = vsub.f32 %v490_v16, %v106_v33 }
  0xb4   :  { %v116_v37 = vmul.f32 1.442695, %v109_v34  ;;  %v120_v38 = vmul.f32 1.442695, %v111_v35  ;;  %v112_v39 = vmul.f32 1.442695, %v107_v36 }
  0xb5   :  { %v118_v42 = vmul.f32 1.442695, %v110_v40  ;;  %v114_v44 = vmul.f32 1.442695, %v108_v41  ;;  %v27_v36 = vld [vmem:[%s573_s1 + $0xb0] sm:$0xff] }
  0xb6   :  { %405 = vpow2.f32 %v116_v37  ;;  %v26_v37 = vld [vmem:[%s573_s1 + $0x98] sm:$0xff] }
  0xb7   :  { %407 = vpow2.f32 %v120_v38  ;;  %v25_v38 = vld [vmem:[%s573_s1 + $0x80] sm:$0xff] }
  0xb8   :  { %409 = vpow2.f32 %v112_v39  ;;  %v24_v39 = vld [vmem:[%s573_s1 + $0x68] sm:$0xff] }
  0xb9   :  { %411 = vpow2.f32 %v118_v42 }
  0xba   :  { %413 = vpow2.f32 %v114_v44 }
  0xbc   :  { %v406_v43 = vpop.eup %405 }
  0xbd   :  { %v408_v45 = vpop.eup %407  ;;  %131 = vrot.lane.b32.xlu1 %v406_v43, %s425_s0 }
  0xbe   :  { %v410_v46 = vpop.eup %409  ;;  %135 = vrot.lane.b32.xlu2 %v408_v45, %s425_s0 }
  0xbf   :  { %127 = vrot.lane.b32.xlu0 %v410_v46, %s425_s0  ;;  %v412_v47 = vpop.eup %411 }
  0xc0   :  { %v414_v48 = vpop.eup %413 }
  0xc5   :  { %133 = vrot.lane.b32.xlu1 %v412_v47, %s425_s0 }
  0xc7   :  { %129 = vrot.lane.b32.xlu0 %v414_v48, %s425_s0 }
 0x118   :  { %v136_v54 = vpop.permute.xlu2 %135 }
 0x12f   :  { %v132_v52 = vpop.permute.xlu1 %131 }
 0x131   :  { %v128_v50 = vpop.permute.xlu0 %127 }
 0x132   :  { %382 = vmatmul.msk.f32.vlgmr.msra.gmra.mxu1 %vm137_vm3, %v128_v50 }
 0x137   :  { %v134_v53 = vpop.permute.xlu1 %133 }
 0x139   :  { %v130_v51 = vpop.permute.xlu0 %129 }
 0x13a   :  { %383 = vmatmul.msk.f32.gmra.mxu1 %vm137_vm3, %v130_v51 }
 0x142   :  { %384 = vmatmul.msk.f32.gmra.mxu1 %vm137_vm3, %v132_v52  ;;  %v32_v52 = vld [vmem:[%s573_s1 + $0x2a] ss:$0 sm:$0xff] }
 0x14a   :  { %385 = vmatmul.msk.f32.gmra.mxu1 %vm137_vm3, %v134_v53 }
 0x152   :  { %386 = vmatmul.msk.f32.gmra.mxu1 %vm137_vm3, %v136_v54 }
 0x1af   :  { %v169_v55 = vpop.f32.mrf.mxu1 }
 0x1b0   :  { %v184_v0 = vmul.f32 %v169_v55, %v486_v14  ;;  %v33_v55 = vld [vmem:[%s573_s1 + $0x2b] ss:$0 sm:$0xff] }
 0x1b7   :  { %v172_v56 = vpop.f32.mrf.mxu1 }
 0x1b8   :  { %v185_v63 = vmul.f32 %v172_v56, %v490_v16 }
 0x1bf   :  { %v175_v57 = vpop.f32.mrf.mxu1 }
 0x1c0   :  { %v186_v62 = vmul.f32 %v175_v57, %v82_v21 }
 0x1c7   :  { %v178_v58 = vpop.f32.mrf.mxu1 }
 0x1c8   :  { %v187_v61 = vmul.f32 %v178_v58, %v488_v15 }
 0x1cf   :  { %v181_v59 = vpop.f32.mrf.mxu1 }
 0x1d0   :  { %v188_v60 = vmul.f32 %v181_v59, %v88_v17  ;;  %v428_v59 = vmov 16.0  }
 0x1d2   :  { %204 = vmatpush.msra.mxu2 %v188_v60 }
 0x1d4   :  { %205 = vmatpush.msra.mxu2 %v187_v61 }
 0x1d6   :  { %206 = vmatpush.msra.mxu2 %v186_v62 }
 0x1d8   :  { %207 = vmatpush.msra.mxu2 %v185_v63 }
 0x1da   :  { %208 = vmatpush.msra.mxu2 %v184_v0 }
 0x1db   :  { %387 = vmatmul.msk.f32.vlgmr.msra.gmra.mxu2 %vm189_vm4, %v29_v1  ;;  %vm370_vm4 = vcmask 1024  }
 0x1dc   :  { %388 = vmatpush.msk.msrb.mxu2 %vm148_vm2, %v28_v49  ;;  %v31_v49 = vld [vmem:[%s573_s1 + $0x29] ss:$0 sm:$0xff] }
 0x1de   :  { %324 = vmatpush.msra.mxu2 %v27_v36 }
 0x1e0   :  { %325 = vmatpush.msra.mxu2 %v26_v37 }
 0x1e2   :  { %326 = vmatpush.msra.mxu2 %v25_v38 }
 0x1e4   :  { %327 = vmatpush.msra.mxu2 %v24_v39 }
 0x25e   :  { %v210_v2 = vpop.f32.mrf.mxu2 }
 0x25f   :  { %214 = vrot.lane.b32.xlu2 %v210_v2, %s426_s13 }
 0x2b9   :  { %v215_v3 = vpop.permute.xlu2 %214 }
 0x2ba   :  { %389 = vmatmul.msk.f32.vlgmr.msrb.gmra.mxu2 %vm137_vm3, %v215_v3 }
 0x33d   :  { %v235_v8 = vpop.f32.mrf.mxu2 }
 0x33e   :  { %415 = vrcp.f32 %v235_v8  ;;  %v249_v12 = vand.u32 2147483648, %v235_v8  ;;  %v247_v14 = vand.u32 2147483647, %v235_v8  ;;  %vm243_vm6 = vweird.f32 %v235_v8 }
 0x33f   :  { %417 = vrcp.f32 %v427_v24 }
 0x340   :  { %v250_v16 = vor.u32 1.1754944e-38, %v249_v12  ;;  %vm248_vm8 = vcmp.eq.f32.partialorder %v247_v14, 8.507059e+37 }
 0x344   :  { %v416_v9 = vpop.eup %415 }
 0x345   :  { %v239_v10 = vmul.f32 %v416_v9, %v235_v8  ;;  %vm244_vm5 = vweird.f32 %v416_v9  ;;  %v418_v25 = vpop.eup %417 }
 0x346   :  { %vm245_vm7 = vmor %vm243_vm6, %vm244_vm5  ;;  %v282_v26 = vmul.f32 32.0, %v418_v25  ;;  %vm286_vm11 = vweird.f32 %v418_v25 }
 0x347   :  { %v240_v11 = vsub.f32 1.0, %v239_v10 }
 0x348   :  { %v283_v27 = vsub.f32 1.0, %v282_v26  ;;  %v37_v26 = vld [vmem:[%s573_s1 + $0x2f] ss:$0 sm:$0xff] }
 0x349   :  { %v241_v13 = vmul.f32 %v416_v9, %v240_v11 }
 0x34a   :  { %v284_v28 = vmul.f32 %v418_v25, %v283_v27 }
 0x34b   :  { %v242_v15 = vadd.f32 %v416_v9, %v241_v13 }
 0x34c   :  { %v285_v29 = vadd.f32 %v418_v25, %v284_v28 }
 0x34d   :  { %v246_v17 = vsel %vm245_vm7, %v416_v9, %v242_v15 }
 0x34e   :  { %v251_v18 = vsel %vm248_vm8, %v250_v16, %v246_v17  ;;  %v287_v30 = vsel %vm286_vm11, %v418_v25, %v285_v29  ;;  %v34_v17 = vld [vmem:[%s573_s1 + $0x2c] ss:$0 sm:$0xff] }
 0x34f   :  { %v252_v19 = vmul.f32 %v251_v18, %v210_v2 }
 0x351   :  { %390 = vmatmul.msk.f32.vlgmr.msrb.gmra.mxu3 %vm253_vm9, %v252_v19  ;;  %v35_v19 = vld [vmem:[%s573_s1 + $0x2d] ss:$0 sm:$0xff] }
 0x3d4   :  { %v274_v21 = vpop.f32.mrf.mxu3 }
 0x3d5   :  { %v275_v22 = vadd.f32 %v274_v21, %v30_v20 }
 0x3d7   :  { %v278_v23 = vsel %vm277_vm10, %v275_v22, 0.0 }
 0x3d8   :  { %279 = vadd.xlane.f32.xlu0 %v278_v23 }
 0x44b   :  { %v280_v31 = vpop.xlane.xlu0 %279 }
 0x44c   :  { %v288_v32 = vmul.f32 %v287_v30, %v280_v31 }
 0x44e   :  { %v289_v33 = vsub.f32 %v275_v22, %v288_v32  ;;  %v36_v22 = vld [vmem:[%s573_s1 + $0x2e] ss:$0 sm:$0xff] }
 0x450   :  { %v290_v34 = vmul.f32 %v289_v33, %v289_v33 }
 0x452   :  { %v291_v35 = vsel %vm277_vm10, %v290_v34, 0.0 }
 0x453   :  { %292 = vadd.xlane.f32.xlu1 %v291_v35 }
 0x4c6   :  { %v293_v40 = vpop.xlane.xlu1 %292 }
 0x4c7   :  { %v294_v41 = vmul.f32 %v293_v40, %v287_v30 }
 0x4c9   :  { %v295_v42 = vadd.f32 1e-05, %v294_v41 }
 0x4cb   :  { %419 = vrsqrt.f32 %v295_v42  ;;  %vm302_vm13 = vweird.f32 %v295_v42 }
 0x4cc   :  { %421 = vrcp.f32 %v428_v59 }
 0x4d1   :  { %v420_v43 = vpop.eup %419 }
 0x4d2   :  { %v297_v44 = vmul.f32 %v420_v43, %v295_v42  ;;  %vm303_vm12 = vweird.f32 %v420_v43  ;;  %v422_v60 = vpop.eup %421 }
 0x4d3   :  { %vm304_vm14 = vmor %vm302_vm13, %vm303_vm12  ;;  %v337_v61 = vmul.f32 16.0, %v422_v60  ;;  %vm341_vm0 = vweird.f32 %v422_v60 }
 0x4d4   :  { %v298_v45 = vmul.f32 %v420_v43, %v297_v44 }
 0x4d5   :  { %v338_v62 = vsub.f32 1.0, %v337_v61 }
 0x4d6   :  { %v299_v46 = vmul.f32 0.5, %v298_v45 }
 0x4d7   :  { %v339_v63 = vmul.f32 %v422_v60, %v338_v62 }
 0x4d8   :  { %v300_v47 = vsub.f32 1.5, %v299_v46 }
 0x4d9   :  { %v340_v0 = vadd.f32 %v422_v60, %v339_v63 }
 0x4da   :  { %v301_v48 = vmul.f32 %v420_v43, %v300_v47 }
 0x4db   :  { %v342_v1 = vsel %vm341_vm0, %v422_v60, %v340_v0 }
 0x4dc   :  { %v305_v50 = vsel %vm304_vm14, %v420_v43, %v301_v48 }
 0x4dd   :  { %v306_v51 = vmul.f32 %v305_v50, %v289_v33 }
 0x4df   :  { %v307_v53 = vmul.f32 %v306_v51, %v31_v49 }
 0x4e1   :  { %v308_v54 = vadd.f32 %v307_v53, %v32_v52 }
 0x4e3   :  { %391 = vmatmul.msk.f32.vlgmr.msra.gmra.mxu2 %vm253_vm9, %v308_v54 }
 0x566   :  { %v329_v56 = vpop.f32.mrf.mxu2 }
 0x567   :  { %v330_v57 = vadd.f32 %v329_v56, %v33_v55 }
 0x569   :  { %v333_v58 = vsel %vm332_vm15, %v330_v57, 0.0 }
 0x56a   :  { %334 = vadd.xlane.f32.xlu2 %v333_v58 }
 0x5dd   :  { %v335_v2 = vpop.xlane.xlu2 %334 }
 0x5de   :  { %v343_v3 = vmul.f32 %v342_v1, %v335_v2 }
 0x5e0   :  { %v344_v4 = vsub.f32 %v330_v57, %v343_v3 }
 0x5e2   :  { %v345_v5 = vmul.f32 %v344_v4, %v344_v4 }
 0x5e4   :  { %v346_v6 = vsel %vm332_vm15, %v345_v5, 0.0 }
 0x5e5   :  { %347 = vadd.xlane.f32.xlu2 %v346_v6 }
 0x658   :  { %v348_v7 = vpop.xlane.xlu2 %347 }
 0x659   :  { %v349_v8 = vmul.f32 %v348_v7, %v342_v1 }
 0x65b   :  { %v350_v9 = vadd.f32 1e-05, %v349_v8 }
 0x65d   :  { %423 = vrsqrt.f32 %v350_v9  ;;  %vm357_vm2 = vweird.f32 %v350_v9 }
 0x663   :  { %v424_v10 = vpop.eup %423 }
 0x664   :  { %v352_v11 = vmul.f32 %v424_v10, %v350_v9  ;;  %vm358_vm1 = vweird.f32 %v424_v10 }
 0x665   :  { %vm359_vm3 = vmor %vm357_vm2, %vm358_vm1 }
 0x666   :  { %v353_v12 = vmul.f32 %v424_v10, %v352_v11 }
 0x668   :  { %v354_v13 = vmul.f32 0.5, %v353_v12 }
 0x66a   :  { %v355_v14 = vsub.f32 1.5, %v354_v13 }
 0x66c   :  { %v356_v15 = vmul.f32 %v424_v10, %v355_v14 }
 0x66e   :  { %v360_v16 = vsel %vm359_vm3, %v424_v10, %v356_v15 }
 0x66f   :  { %v361_v18 = vmul.f32 %v360_v16, %v344_v4 }
 0x671   :  { %v362_v20 = vmul.f32 %v361_v18, %v34_v17 }
 0x673   :  { %v363_v21 = vadd.f32 %v362_v20, %v35_v19 }
 0x675   :  { %v364_v23 = vmax.f32 %v363_v21, 0.0 }
 0x677   :  { %v365_v24 = vmul.f32 %v364_v23, %v36_v22 }
 0x679   :  { %v366_v25 = vsel %vm332_vm15, %v365_v24, 0.0 }
 0x67a   :  { %367 = vadd.xlane.f32.xlu0 %v366_v25 }
 0x6ed   :  { %v368_v27 = vpop.xlane.xlu0 %367 }
 0x6ee   :  { %v369_v28 = vadd.f32 %v368_v27, %v37_v26 }
 0x6f0   :  { %371 = vst.msk [vmem:[%s575_s2] sm:$0x3] %vm370_vm4, %v369_v28 }

</bundles_post_ra>
